<compile_context>
chip_gen: v6e
topology: v6e:2x2x1
jax: 0.10.0
libtpu: 0.0.40
codegen_flags: <defaults>
</compile_context>

<pallas_src>
import jax
import jax.numpy as jnp
from jax.experimental import pallas as pl
from jax.experimental.pallas import tpu as pltpu

INP_DIM = 32
OUT_DIM = 100
BN_EPS = 1e-5

# lane-dense padded widths (multiples of 128) for hidden/output features
H1_PAD = 384    # 300 -> 384
H2_PAD = 384    # 300 -> 384
H3_PAD = 256    # 200 -> 256
OUT_PAD = 128   # 100 -> 128


def _batchnorm(h, gamma, beta, inv_b):
    # training-mode BatchNorm1d forward: per-batch mean, biased variance.
    # (h - mean) computed once; scale folded into a (1,N) vector so the (B,N)
    # broadcast work is a single multiply + add; rsqrt goes to the EUP.
    mean = jnp.sum(h, axis=0, keepdims=True) * inv_b
    d = h - mean
    var = jnp.sum(d * d, axis=0, keepdims=True) * inv_b
    scale = gamma * jax.lax.rsqrt(var + BN_EPS)        # (1, N)
    return d * scale + beta


def floodfc_kernel(
    x_ref,
    w1_ref, b1_ref, g1_ref, be1_ref,
    w2_ref, b2_ref, g2_ref, be2_ref,
    w3_ref, b3_ref, g3_ref, be3_ref,
    w4_ref, b4_ref,
    o_ref,
):
    inv_b = jnp.float32(1.0 / x_ref.shape[0])
    x = x_ref[...].astype(jnp.bfloat16)                      # (B, 32)

    # layer1: Linear(INP_DIM, 300) -> ReLU -> BatchNorm1d(300)   [384 lanes]
    h1 = jnp.dot(x, w1_ref[...], preferred_element_type=jnp.float32) + b1_ref[...]
    h1 = jnp.maximum(h1, 0.0)
    h1 = _batchnorm(h1, g1_ref[...], be1_ref[...], inv_b)

    # layer2: Linear(300, 300) -> ReLU -> BatchNorm1d(300)       [384 lanes]
    h2 = jnp.dot(h1.astype(jnp.bfloat16), w2_ref[...],
                 preferred_element_type=jnp.float32) + b2_ref[...]
    h2 = jnp.maximum(h2, 0.0)
    h2 = _batchnorm(h2, g2_ref[...], be2_ref[...], inv_b)

    # layer3: Linear(300, 200) -> Sigmoid -> BatchNorm1d(200)    [256 lanes]
    h3 = jnp.dot(h2.astype(jnp.bfloat16), w3_ref[...],
                 preferred_element_type=jnp.float32) + b3_ref[...]
    h3 = jax.nn.sigmoid(h3)
    h3 = _batchnorm(h3, g3_ref[...], be3_ref[...], inv_b)

    # layerOut: Linear(200, 100)                                 [128 lanes]
    o_ref[...] = jnp.dot(h3.astype(jnp.bfloat16), w4_ref[...],
                         preferred_element_type=jnp.float32) + b4_ref[...]


def floodfc_forward(x, params, *, slice_output=True):
    """x: (B, INP_DIM) float32.  Returns (B, 100) by default; pass
    slice_output=False to get the padded (B, 128) kernel output directly and
    avoid the extra HBM copy when the consumer tolerates padded lanes."""
    B = x.shape[0]
    vmem = pl.BlockSpec(memory_space=pltpu.MemorySpace.VMEM)
    args = (
        x,
        params["w1"], params["b1"], params["g1"], params["be1"],
        params["w2"], params["b2"], params["g2"], params["be2"],
        params["w3"], params["b3"], params["g3"], params["be3"],
        params["w4"], params["b4"],
    )
    out_pad = pl.pallas_call(
        floodfc_kernel,
        out_shape=jax.ShapeDtypeStruct((B, OUT_PAD), jnp.float32),
        in_specs=[vmem] * len(args),
        out_specs=vmem,
        compiler_params=pltpu.CompilerParams(vmem_limit_bytes=16 << 20),
    )(*args)
    if slice_output:
        return out_pad[:, :OUT_DIM]
    return out_pad


def init_params(key):
    """PyTorch-default-like init (Linear: U(-1/sqrt(in), 1/sqrt(in)); BN: gamma=1,
    beta=0).  Weights stored pre-transposed [in, out], zero-padded on the output
    (and, for hidden layers, input) side to lane-dense shapes, cast to bf16.
    Biases / gamma / beta kept f32, zero-padded (zero gamma keeps padded lanes
    inert through every BN, including after the sigmoid)."""
    def linear(key, fan_in, fan_out, in_pad, out_pad):
        kw, kb = jax.random.split(key)
        bound = 1.0 / jnp.sqrt(jnp.float32(fan_in))
        w = jax.random.uniform(kw, (fan_in, fan_out), jnp.float32, -bound, bound)
        b = jax.random.uniform(kb, (1, fan_out), jnp.float32, -bound, bound)
        w_pad = jnp.zeros((in_pad, out_pad), jnp.float32).at[:fan_in, :fan_out].set(w)
        b_pad = jnp.zeros((1, out_pad), jnp.float32).at[:, :fan_out].set(b)
        return w_pad.astype(jnp.bfloat16), b_pad

    def bn(dim, dim_pad):
        g = jnp.zeros((1, dim_pad), jnp.float32).at[:, :dim].set(1.0)
        b = jnp.zeros((1, dim_pad), jnp.float32)
        return g, b

    k1, k2, k3, k4 = jax.random.split(key, 4)
    # w1 keeps its true 32-row contraction dim (sublane-legal for bf16); only
    # the output side is padded — no zero-row DMA, no wrapper-side x padding.
    w1, b1 = linear(k1, INP_DIM, 300, INP_DIM, H1_PAD)
    w2, b2 = linear(k2, 300, 300, H1_PAD, H2_PAD)
    w3, b3 = linear(k3, 300, 200, H2_PAD, H3_PAD)
    w4, b4 = linear(k4, 200, OUT_DIM, H3_PAD, OUT_PAD)
    g1, be1 = bn(300, H1_PAD)
    g2, be2 = bn(300, H2_PAD)
    g3, be3 = bn(200, H3_PAD)
    return {
        "w1": w1, "b1": b1, "g1": g1, "be1": be1,
        "w2": w2, "b2": b2, "g2": g2, "be2": be2,
        "w3": w3, "b3": b3, "g3": g3, "be3": be3,
        "w4": w4, "b4": b4,
    }


def _reference(x, p):
    """Pure-JAX reference with numerics matched to the kernel
    (bf16 matmul operands, f32 accumulation, f32 BN)."""
    def bn(h, g, b):
        m = jnp.mean(h, axis=0, keepdims=True)
        d = h - m
        v = jnp.mean(d * d, axis=0, keepdims=True)
        return d * (g * jax.lax.rsqrt(v + BN_EPS)) + b

    def lin(h, w, b):
        return jnp.dot(h.astype(jnp.bfloat16), w,
                       preferred_element_type=jnp.float32) + b

    h = bn(jnp.maximum(lin(x, p["w1"], p["b1"]), 0.0), p["g1"], p["be1"])
    h = bn(jnp.maximum(lin(h, p["w2"], p["b2"]), 0.0), p["g2"], p["be2"])
    h = bn(jax.nn.sigmoid(lin(h, p["w3"], p["b3"])), p["g3"], p["be3"])
    out = lin(h, p["w4"], p["b4"])
    return out[:, :OUT_DIM]


if __name__ == "__main__":
    key = jax.random.PRNGKey(0)
    kx, kp = jax.random.split(key)

    B = 8
    x = jax.random.normal(kx, (B, INP_DIM), jnp.float32)
    params = init_params(kp)

    out = floodfc_forward(x, params)
    out = jax.block_until_ready(out)
    assert out.shape == (B, OUT_DIM), out.shape

    # padded-output path: real lanes identical, padded lanes exactly zero
    out_pad = jax.block_until_ready(floodfc_forward(x, params, slice_output=False))
    assert out_pad.shape == (B, OUT_PAD), out_pad.shape
    assert jnp.allclose(out_pad[:, :OUT_DIM], out)
    assert jnp.all(out_pad[:, OUT_DIM:] == 0.0)

    expected = _reference(x, params)
    assert jnp.allclose(out, expected, atol=1e-3, rtol=1e-3), (
        float(jnp.max(jnp.abs(out - expected))))

    print("KERNEL_OK")
</pallas_src>

<mosaic_0001>
module attributes {stable_mosaic.version = 11 : i64} {
  func.func @floodfc_kernel(%arg0: memref<8x32xf32, #tpu.memory_space<vmem>>, %arg1: memref<32x384xbf16, #tpu.memory_space<vmem>>, %arg2: memref<1x384xf32, #tpu.memory_space<vmem>>, %arg3: memref<1x384xf32, #tpu.memory_space<vmem>>, %arg4: memref<1x384xf32, #tpu.memory_space<vmem>>, %arg5: memref<384x384xbf16, #tpu.memory_space<vmem>>, %arg6: memref<1x384xf32, #tpu.memory_space<vmem>>, %arg7: memref<1x384xf32, #tpu.memory_space<vmem>>, %arg8: memref<1x384xf32, #tpu.memory_space<vmem>>, %arg9: memref<384x256xbf16, #tpu.memory_space<vmem>>, %arg10: memref<1x256xf32, #tpu.memory_space<vmem>>, %arg11: memref<1x256xf32, #tpu.memory_space<vmem>>, %arg12: memref<1x256xf32, #tpu.memory_space<vmem>>, %arg13: memref<256x128xbf16, #tpu.memory_space<vmem>>, %arg14: memref<1x128xf32, #tpu.memory_space<vmem>>, %arg15: memref<8x128xf32, #tpu.memory_space<vmem>>) attributes {dimension_semantics = [], scalar_prefetch = 0 : i64, scratch_operands = 0 : i64, tpu.core_type = #tpu.core_type<tc>} {
    %c0 = arith.constant 0 : index
    %c0_0 = arith.constant 0 : index
    %0 = vector.load %arg0[%c0, %c0_0] : memref<8x32xf32, #tpu.memory_space<vmem>>, vector<8x32xf32>
    %1 = arith.truncf %0 : vector<8x32xf32> to vector<8x32xbf16>
    %c0_1 = arith.constant 0 : index
    %c0_2 = arith.constant 0 : index
    %2 = vector.load %arg1[%c0_1, %c0_2] : memref<32x384xbf16, #tpu.memory_space<vmem>>, vector<32x384xbf16>
    %cst = arith.constant dense<0.000000e+00> : vector<8x384xf32>
    %3 = tpu.matmul %1, %2, %cst {dimension_numbers = #tpu.dot_dimension_numbers<[1], [0], [0], [1], [0, 0, 1, 1], [], []>} : vector<8x32xbf16>, vector<32x384xbf16>, vector<8x384xf32> -> vector<8x384xf32>
    %c0_3 = arith.constant 0 : index
    %c0_4 = arith.constant 0 : index
    %4 = vector.load %arg2[%c0_3, %c0_4] : memref<1x384xf32, #tpu.memory_space<vmem>>, vector<1x384xf32>
    %5 = vector.broadcast %4 : vector<1x384xf32> to vector<8x384xf32>
    %6 = arith.addf %3, %5 : vector<8x384xf32>
    %cst_5 = arith.constant 0.000000e+00 : f32
    %7 = vector.broadcast %cst_5 : f32 to vector<8x384xf32>
    %8 = arith.maximumf %6, %7 : vector<8x384xf32>
    %c0_6 = arith.constant 0 : index
    %c0_7 = arith.constant 0 : index
    %9 = vector.load %arg3[%c0_6, %c0_7] : memref<1x384xf32, #tpu.memory_space<vmem>>, vector<1x384xf32>
    %c0_8 = arith.constant 0 : index
    %c0_9 = arith.constant 0 : index
    %10 = vector.load %arg4[%c0_8, %c0_9] : memref<1x384xf32, #tpu.memory_space<vmem>>, vector<1x384xf32>
    %cst_10 = arith.constant dense<0.000000e+00> : vector<384xf32>
    %11 = vector.multi_reduction <add>, %8, %cst_10 [0] : vector<8x384xf32> to vector<384xf32>
    %12 = vector.shape_cast %11 : vector<384xf32> to vector<1x384xf32>
    %cst_11 = arith.constant 1.250000e-01 : f32
    %13 = vector.broadcast %cst_11 : f32 to vector<1x384xf32>
    %14 = arith.mulf %12, %13 : vector<1x384xf32>
    %15 = vector.broadcast %14 : vector<1x384xf32> to vector<8x384xf32>
    %16 = arith.subf %8, %15 : vector<8x384xf32>
    %17 = arith.mulf %16, %16 : vector<8x384xf32>
    %cst_12 = arith.constant dense<0.000000e+00> : vector<384xf32>
    %18 = vector.multi_reduction <add>, %17, %cst_12 [0] : vector<8x384xf32> to vector<384xf32>
    %19 = vector.shape_cast %18 : vector<384xf32> to vector<1x384xf32>
    %cst_13 = arith.constant 1.250000e-01 : f32
    %20 = vector.broadcast %cst_13 : f32 to vector<1x384xf32>
    %21 = arith.mulf %19, %20 : vector<1x384xf32>
    %cst_14 = arith.constant 9.99999974E-6 : f32
    %22 = vector.broadcast %cst_14 : f32 to vector<1x384xf32>
    %23 = arith.addf %21, %22 : vector<1x384xf32>
    %24 = math.rsqrt %23 : vector<1x384xf32>
    %25 = arith.mulf %9, %24 : vector<1x384xf32>
    %26 = vector.broadcast %25 : vector<1x384xf32> to vector<8x384xf32>
    %27 = arith.mulf %16, %26 : vector<8x384xf32>
    %28 = vector.broadcast %10 : vector<1x384xf32> to vector<8x384xf32>
    %29 = arith.addf %27, %28 : vector<8x384xf32>
    %30 = arith.truncf %29 : vector<8x384xf32> to vector<8x384xbf16>
    %c0_15 = arith.constant 0 : index
    %c0_16 = arith.constant 0 : index
    %31 = vector.load %arg5[%c0_15, %c0_16] : memref<384x384xbf16, #tpu.memory_space<vmem>>, vector<384x384xbf16>
    %cst_17 = arith.constant dense<0.000000e+00> : vector<8x384xf32>
    %32 = tpu.matmul %30, %31, %cst_17 {dimension_numbers = #tpu.dot_dimension_numbers<[1], [0], [0], [1], [0, 0, 1, 1], [], []>} : vector<8x384xbf16>, vector<384x384xbf16>, vector<8x384xf32> -> vector<8x384xf32>
    %c0_18 = arith.constant 0 : index
    %c0_19 = arith.constant 0 : index
    %33 = vector.load %arg6[%c0_18, %c0_19] : memref<1x384xf32, #tpu.memory_space<vmem>>, vector<1x384xf32>
    %34 = vector.broadcast %33 : vector<1x384xf32> to vector<8x384xf32>
    %35 = arith.addf %32, %34 : vector<8x384xf32>
    %cst_20 = arith.constant 0.000000e+00 : f32
    %36 = vector.broadcast %cst_20 : f32 to vector<8x384xf32>
    %37 = arith.maximumf %35, %36 : vector<8x384xf32>
    %c0_21 = arith.constant 0 : index
    %c0_22 = arith.constant 0 : index
    %38 = vector.load %arg7[%c0_21, %c0_22] : memref<1x384xf32, #tpu.memory_space<vmem>>, vector<1x384xf32>
    %c0_23 = arith.constant 0 : index
    %c0_24 = arith.constant 0 : index
    %39 = vector.load %arg8[%c0_23, %c0_24] : memref<1x384xf32, #tpu.memory_space<vmem>>, vector<1x384xf32>
    %cst_25 = arith.constant dense<0.000000e+00> : vector<384xf32>
    %40 = vector.multi_reduction <add>, %37, %cst_25 [0] : vector<8x384xf32> to vector<384xf32>
    %41 = vector.shape_cast %40 : vector<384xf32> to vector<1x384xf32>
    %cst_26 = arith.constant 1.250000e-01 : f32
    %42 = vector.broadcast %cst_26 : f32 to vector<1x384xf32>
    %43 = arith.mulf %41, %42 : vector<1x384xf32>
    %44 = vector.broadcast %43 : vector<1x384xf32> to vector<8x384xf32>
    %45 = arith.subf %37, %44 : vector<8x384xf32>
    %46 = arith.mulf %45, %45 : vector<8x384xf32>
    %cst_27 = arith.constant dense<0.000000e+00> : vector<384xf32>
    %47 = vector.multi_reduction <add>, %46, %cst_27 [0] : vector<8x384xf32> to vector<384xf32>
    %48 = vector.shape_cast %47 : vector<384xf32> to vector<1x384xf32>
    %cst_28 = arith.constant 1.250000e-01 : f32
    %49 = vector.broadcast %cst_28 : f32 to vector<1x384xf32>
    %50 = arith.mulf %48, %49 : vector<1x384xf32>
    %cst_29 = arith.constant 9.99999974E-6 : f32
    %51 = vector.broadcast %cst_29 : f32 to vector<1x384xf32>
    %52 = arith.addf %50, %51 : vector<1x384xf32>
    %53 = math.rsqrt %52 : vector<1x384xf32>
    %54 = arith.mulf %38, %53 : vector<1x384xf32>
    %55 = vector.broadcast %54 : vector<1x384xf32> to vector<8x384xf32>
    %56 = arith.mulf %45, %55 : vector<8x384xf32>
    %57 = vector.broadcast %39 : vector<1x384xf32> to vector<8x384xf32>
    %58 = arith.addf %56, %57 : vector<8x384xf32>
    %59 = arith.truncf %58 : vector<8x384xf32> to vector<8x384xbf16>
    %c0_30 = arith.constant 0 : index
    %c0_31 = arith.constant 0 : index
    %60 = vector.load %arg9[%c0_30, %c0_31] : memref<384x256xbf16, #tpu.memory_space<vmem>>, vector<384x256xbf16>
    %cst_32 = arith.constant dense<0.000000e+00> : vector<8x256xf32>
    %61 = tpu.matmul %59, %60, %cst_32 {dimension_numbers = #tpu.dot_dimension_numbers<[1], [0], [0], [1], [0, 0, 1, 1], [], []>} : vector<8x384xbf16>, vector<384x256xbf16>, vector<8x256xf32> -> vector<8x256xf32>
    %c0_33 = arith.constant 0 : index
    %c0_34 = arith.constant 0 : index
    %62 = vector.load %arg10[%c0_33, %c0_34] : memref<1x256xf32, #tpu.memory_space<vmem>>, vector<1x256xf32>
    %63 = vector.broadcast %62 : vector<1x256xf32> to vector<8x256xf32>
    %64 = arith.addf %61, %63 : vector<8x256xf32>
    %65 = arith.negf %64 : vector<8x256xf32>
    %66 = math.exp %65 : vector<8x256xf32>
    %cst_35 = arith.constant 1.000000e+00 : f32
    %67 = vector.broadcast %cst_35 : f32 to vector<8x256xf32>
    %68 = arith.addf %67, %66 : vector<8x256xf32>
    %69 = arith.divf %67, %68 : vector<8x256xf32>
    %c0_36 = arith.constant 0 : index
    %c0_37 = arith.constant 0 : index
    %70 = vector.load %arg11[%c0_36, %c0_37] : memref<1x256xf32, #tpu.memory_space<vmem>>, vector<1x256xf32>
    %c0_38 = arith.constant 0 : index
    %c0_39 = arith.constant 0 : index
    %71 = vector.load %arg12[%c0_38, %c0_39] : memref<1x256xf32, #tpu.memory_space<vmem>>, vector<1x256xf32>
    %cst_40 = arith.constant dense<0.000000e+00> : vector<256xf32>
    %72 = vector.multi_reduction <add>, %69, %cst_40 [0] : vector<8x256xf32> to vector<256xf32>
    %73 = vector.shape_cast %72 : vector<256xf32> to vector<1x256xf32>
    %cst_41 = arith.constant 1.250000e-01 : f32
    %74 = vector.broadcast %cst_41 : f32 to vector<1x256xf32>
    %75 = arith.mulf %73, %74 : vector<1x256xf32>
    %76 = vector.broadcast %75 : vector<1x256xf32> to vector<8x256xf32>
    %77 = arith.subf %69, %76 : vector<8x256xf32>
    %78 = arith.mulf %77, %77 : vector<8x256xf32>
    %cst_42 = arith.constant dense<0.000000e+00> : vector<256xf32>
    %79 = vector.multi_reduction <add>, %78, %cst_42 [0] : vector<8x256xf32> to vector<256xf32>
    %80 = vector.shape_cast %79 : vector<256xf32> to vector<1x256xf32>
    %cst_43 = arith.constant 1.250000e-01 : f32
    %81 = vector.broadcast %cst_43 : f32 to vector<1x256xf32>
    %82 = arith.mulf %80, %81 : vector<1x256xf32>
    %cst_44 = arith.constant 9.99999974E-6 : f32
    %83 = vector.broadcast %cst_44 : f32 to vector<1x256xf32>
    %84 = arith.addf %82, %83 : vector<1x256xf32>
    %85 = math.rsqrt %84 : vector<1x256xf32>
    %86 = arith.mulf %70, %85 : vector<1x256xf32>
    %87 = vector.broadcast %86 : vector<1x256xf32> to vector<8x256xf32>
    %88 = arith.mulf %77, %87 : vector<8x256xf32>
    %89 = vector.broadcast %71 : vector<1x256xf32> to vector<8x256xf32>
    %90 = arith.addf %88, %89 : vector<8x256xf32>
    %91 = arith.truncf %90 : vector<8x256xf32> to vector<8x256xbf16>
    %c0_45 = arith.constant 0 : index
    %c0_46 = arith.constant 0 : index
    %92 = vector.load %arg13[%c0_45, %c0_46] : memref<256x128xbf16, #tpu.memory_space<vmem>>, vector<256x128xbf16>
    %cst_47 = arith.constant dense<0.000000e+00> : vector<8x128xf32>
    %93 = tpu.matmul %91, %92, %cst_47 {dimension_numbers = #tpu.dot_dimension_numbers<[1], [0], [0], [1], [0, 0, 1, 1], [], []>} : vector<8x256xbf16>, vector<256x128xbf16>, vector<8x128xf32> -> vector<8x128xf32>
    %c0_48 = arith.constant 0 : index
    %c0_49 = arith.constant 0 : index
    %94 = vector.load %arg14[%c0_48, %c0_49] : memref<1x128xf32, #tpu.memory_space<vmem>>, vector<1x128xf32>
    %95 = vector.broadcast %94 : vector<1x128xf32> to vector<8x128xf32>
    %96 = arith.addf %93, %95 : vector<8x128xf32>
    %c0_50 = arith.constant 0 : index
    %c0_51 = arith.constant 0 : index
    %97 = vector.load %arg15[%c0_50, %c0_51] : memref<8x128xf32, #tpu.memory_space<vmem>>, vector<8x128xf32>
    tpu.vector_store %arg15[%c0_50, %c0_51], %96 {strides = array<i32>} : memref<8x128xf32, #tpu.memory_space<vmem>>, vector<8x128xf32>,
    return
  }
}

</mosaic_0001>

<bundles_post_ra>
// kernel: tpu_custom_call.1
= control target key start
LH: loop header
LB: loop body
LE: loop exit
PB: predicated region body
PF: predicated region fallthrough
CT: control target
= control target key end

     0   :  { %20 = vsyncpa [#allocation3], 0  ;;  %s2727_s0 = inlined_call_operand.hbm [shape: f32[8,32], index: 0, kind: input, shape index: {}]   ;;  %s2728_s1 = inlined_call_operand.hbm [shape: bf16[32,384], index: 1, kind: input, shape index: {}]   ;;  %s2729_s2 = inlined_call_operand.vmem [shape: f32[1,384], index: 2, kind: input, shape index: {}]   ;;  %s2730_s3 = inlined_call_operand.hbm [shape: f32[1,384], index: 3, kind: input, shape index: {}]   ;;  %s2731_s4 = inlined_call_operand.vmem [shape: f32[1,384], index: 4, kind: input, shape index: {}]   ;;  %s2732_s5 = inlined_call_operand.hbm [shape: bf16[384,384], index: 5, kind: input, shape index: {}]   ;;  %s2733_s6 = inlined_call_operand.vmem [shape: f32[1,384], index: 6, kind: input, shape index: {}]   ;;  %s2734_s7 = inlined_call_operand.vmem [shape: f32[1,384], index: 7, kind: input, shape index: {}]   ;;  %s2735_s8 = inlined_call_operand.hbm [shape: f32[1,384], index: 8, kind: input, shape index: {}]   ;;  %s2736_s9 = inlined_call_operand.hbm [shape: bf16[384,256], index: 9, kind: input, shape index: {}]   ;;  %s2737_s10 = inlined_call_operand.vmem [shape: f32[1,256], index: 10, kind: input, shape index: {}]   ;;  %s2738_s11 = inlined_call_operand.vmem [shape: f32[1,256], index: 11, kind: input, shape index: {}]   ;;  %s2739_s12 = inlined_call_operand.vmem [shape: f32[1,256], index: 12, kind: input, shape index: {}]   ;;  %s2740_s13 = inlined_call_operand.hbm [shape: bf16[256,128], index: 13, kind: input, shape index: {}]   ;;  %s2741_s14 = inlined_call_operand.vmem [shape: f32[1,128], index: 14, kind: input, shape index: {}]   ;;  %s2742_s15 = inlined_call_operand.hbm [shape: f32[8,128], index: 15, kind: output, shape index: {}]  }
   0x1   :  { %21 = vsyncpa [#allocation6], 0 }
   0x2   :  { %22 = vsyncpa [#allocation9], 0 }
   0x3   :  { %23 = vsyncpa [#allocation12], 0 }
   0x4   :  { %24 = vsyncpa [#allocation4], 0  ;;  %s2508_s18 = smov [#allocation5]  }
   0x5   :  { %s40_s19 = sshll.u32 %s2508_s18, 4  ;;  %s41_s19 = int_to_ptr.vmem [resolvable:$true] %s40_s19 }
   0x6   :  { %s2346_s20 = scalar_lea.vmem %s41_s19, 768  ;;  %p2351_p1 = scmp.lt.s32.totalorder %s41_s19, %s41_s19 }
   0x7   :  { %p2347_p0 = scmp.ne.s32.totalorder %s41_s19, %s2346_s20  ;;  %p2352_p2 = scmp.lt.s32.totalorder %s2346_s20, %s2346_s20 }
   0x9   :  { %p2353_p3 = por %p2352_p2, %p2351_p1 }
   0xb   :  { %p2354_p4 = pnand %p2353_p3, %p2347_p0 }
   0xd   :  { %2357 = shalt.err (!%p2354_p4)
}
   0xe   :  { %s2509_s21 = smov 192   ;;  %s2510_s22 = smov 12  }
   0xf   :  { %46 = dma.hbm_to_vmem [thread:$0]  %s2728_s1, 768, %s41_s19, [#allocation6], %s2509_s21, %s2509_s21, %s2510_s22  }
  0x10   :  { %s2511_s25 = smov [#allocation8]   ;;  %s2512_s27 = smov [#allocation11]  }
  0x11   :  { %s66_s26 = sshll.u32 %s2511_s25, 4  ;;  %s92_s28 = sshll.u32 %s2512_s27, 4  ;;  %s67_s26 = int_to_ptr.vmem [resolvable:$true] %s66_s26  ;;  %s93_s28 = int_to_ptr.vmem [resolvable:$true] %s92_s28 }
  0x12   :  { %s2366_s29 = scalar_lea.vmem %s67_s26, 9216  ;;  %p2371_p6 = scmp.lt.s32.totalorder %s67_s26, %s67_s26 }
  0x13   :  { %p2367_p5 = scmp.ne.s32.totalorder %s67_s26, %s2366_s29  ;;  %p2372_p7 = scmp.lt.s32.totalorder %s2366_s29, %s2366_s29 }
  0x15   :  { %p2373_p8 = por %p2372_p7, %p2371_p6 }
  0x17   :  { %p2374_p9 = pnand %p2373_p8, %p2367_p5 }
  0x19   :  { %2377 = shalt.err (!%p2374_p9)
}
  0x1a   :  { %72 = dma.hbm_to_vmem [thread:$0]  %s2732_s5, 9216, %s67_s26, [#allocation9], %s2509_s21, %s2509_s21, %s2510_s22  }
  0x1b   :  { %s2386_s17 = scalar_lea.vmem %s93_s28, 6144  ;;  %p2391_p11 = scmp.lt.s32.totalorder %s93_s28, %s93_s28 }
  0x1c   :  { %p2387_p10 = scmp.ne.s32.totalorder %s93_s28, %s2386_s17  ;;  %p2392_p12 = scmp.lt.s32.totalorder %s2386_s17, %s2386_s17 }
  0x1e   :  { %p2393_p13 = por %p2392_p12, %p2391_p11 }
  0x20   :  { %p2394_p0 = pnand %p2393_p13, %p2387_p10 }
  0x22   :  { %2397 = shalt.err (!%p2394_p0)
}
  0x23   :  { %s2513_s1 = smov 128   ;;  %s2514_s18 = smov 8  }
  0x24   :  { %98 = dma.hbm_to_vmem [thread:$0]  %s2736_s9, 6144, %s93_s28, [#allocation12], %s2513_s1, %s2513_s1, %s2514_s18  }
  0x25   :  { %s2515_s23 = smov [#allocation2]   ;;  %s2516_s25 = smov [#allocation7]  }
  0x26   :  { %s31_s24 = sshll.u32 %s2515_s23, 4  ;;  %s55_s27 = sshll.u32 %s2516_s25, 4  ;;  %s32_s24 = int_to_ptr.vmem [resolvable:$true] %s31_s24  ;;  %s56_s27 = int_to_ptr.vmem [resolvable:$true] %s55_s27 }
  0x27   :  { %s2406_s5 = scalar_lea.vmem %s32_s24, 128  ;;  %p2411_p2 = scmp.lt.s32.totalorder %s32_s24, %s32_s24 }
  0x28   :  { %p2407_p1 = scmp.ne.s32.totalorder %s32_s24, %s2406_s5  ;;  %p2412_p3 = scmp.lt.s32.totalorder %s2406_s5, %s2406_s5 }
  0x2a   :  { %p2413_p4 = por %p2412_p3, %p2411_p2 }
  0x2c   :  { %p2414_p5 = pnand %p2413_p4, %p2407_p1 }
  0x2e   :  { %2417 = shalt.err (!%p2414_p5)
}
  0x2f   :  { %34 = dma.hbm_to_vmem [thread:$0]  %s2727_s0, 128, %s32_s24, [#allocation3]  }
  0x30   :  { %s2426_s26 = scalar_lea.vmem %s56_s27, 48  ;;  %s2430_s9 = scalar_lea.vmem %s56_s27, 64 }
  0x31   :  { %p2427_p6 = scmp.ne.s32.totalorder %s56_s27, %s2426_s26  ;;  %p2431_p7 = scmp.lt.s32.totalorder %s56_s27, %s56_s27 }
  0x32   :  { %p2432_p8 = scmp.lt.s32.totalorder %s2430_s9, %s2426_s26 }
  0x34   :  { %p2433_p9 = por %p2432_p8, %p2431_p7 }
  0x36   :  { %p2434_p10 = pnand %p2433_p9, %p2427_p6 }
  0x38   :  { %2437 = shalt.err (!%p2434_p10)
}
  0x39   :  { %58 = dma.hbm_to_vmem [thread:$0]  %s2730_s3, 48, %s56_s27, [#allocation6]  }
  0x3a   :  { %s2517_s30 = smov [#allocation10]   ;;  %s2518_s17 = smov [#allocation13]  }
  0x3b   :  { %s83_s16 = sshll.u32 %s2517_s30, 4  ;;  %s110_s1 = sshll.u32 %s2518_s17, 4  ;;  %s84_s16 = int_to_ptr.vmem [resolvable:$true] %s83_s16  ;;  %s111_s1 = int_to_ptr.vmem [resolvable:$true] %s110_s1 }
  0x3c   :  { %s2446_s18 = scalar_lea.vmem %s84_s16, 48  ;;  %s2450_s0 = scalar_lea.vmem %s84_s16, 64 }
  0x3d   :  { %p2447_p11 = scmp.ne.s32.totalorder %s84_s16, %s2446_s18  ;;  %p2451_p12 = scmp.lt.s32.totalorder %s84_s16, %s84_s16 }
  0x3e   :  { %p2452_p13 = scmp.lt.s32.totalorder %s2450_s0, %s2446_s18 }
  0x40   :  { %p2453_p0 = por %p2452_p13, %p2451_p12 }
  0x42   :  { %p2454_p1 = pnand %p2453_p0, %p2447_p11 }
  0x44   :  { %2457 = shalt.err (!%p2454_p1)
}
  0x45   :  { %86 = dma.hbm_to_vmem [thread:$0]  %s2735_s8, 48, %s84_s16, [#allocation9]  }
  0x46   :  { %s2466_s23 = scalar_lea.vmem %s111_s1, 2048  ;;  %p2471_p3 = scmp.lt.s32.totalorder %s111_s1, %s111_s1 }
  0x47   :  { %p2467_p2 = scmp.ne.s32.totalorder %s111_s1, %s2466_s23  ;;  %p2472_p4 = scmp.lt.s32.totalorder %s2466_s23, %s2466_s23 }
  0x49   :  { %p2473_p5 = por %p2472_p4, %p2471_p3 }
  0x4b   :  { %p2474_p6 = pnand %p2473_p5, %p2467_p2 }
  0x4d   :  { %2477 = shalt.err (!%p2474_p6)
}
  0x4e   :  { %s2519_s3 = smov 64   ;;  %s2520_s24 = smov 4  }
  0x4f   :  { %116 = dma.hbm_to_vmem [thread:$0]  %s2740_s13, 2048, %s111_s1, [#allocation12], %s2519_s3, %s2519_s3, %s2520_s24  }
  0x50   :  { %2498 = dma.done.wait [#allocation3], 128  }
  0x51   :  { %2499 = vsyncadd [#allocation3], 4294967168 }
  0x52   :  { %2500 = dma.done.wait [#allocation6], 816  }
  0x53   :  { %2501 = vsyncadd [#allocation6], 4294966480 }
  0x54   :  { %2502 = dma.done.wait [#allocation9], 9264  }
  0x55   :  { %2503 = vsyncadd [#allocation9], 4294958032 }
  0x56   :  { %2504 = dma.done.wait [#allocation12], 8192  }
  0x57   :  { %2505 = vsyncadd [#allocation12], 4294959104  ;;  %v2521_v0 = vmov 0   ;;  %v2122_v1 = vld [vmem:[#allocation5 + $0x1c] ss:$12 sps:$4 sm:$0xff]   ;;  %vm200_vm0 = vcmask 261120   ;;  %v153_v59 = vlaneseq }
  0x58   :  { %236 = vmatprep.mubr.bf16.mxu1 %v2521_v0  ;;  %v2124_v2 = vld [vmem:[#allocation5 + $0x18] ss:$12 sps:$4 sm:$0xff]   ;;  %216 = vmatprep.subr.bf16.mxu1 %v2122_v1  ;;  %v2127_v4 = vld [vmem:[#allocation5] ss:$12 sps:$4 sm:$0xff]   ;;  %v2522_v8 = vmov 0.0   ;;  %vm2523_vm1 = vmmov 0  }
  0x59   :  { %v2125_v3 = vld [vmem:[#allocation5 + $0x4] ss:$12 sps:$4 sm:$0xff]   ;;  %217 = vmatpush1.bf16.msra.mxu1 %v2124_v2  ;;  %v141_v5 = vld [vmem:[#allocation2] sm:$0xff]  ;;  %v2128_v6 = vld [vmem:[#allocation5 + $0x20] ss:$12 sps:$4 sm:$0xff]   ;;  %v2634_v60 = vshrl.u32 %v153_v59, 7 }
  0x5a   :  { %218 = vmatprep.subr.bf16.mxu1 %v2125_v3  ;;  %v142_v7 = vpack.c.bf16 %v141_v5, %v141_v5  ;;  %v2129_v9 = vld [vmem:[#allocation5 + $0x8] ss:$12 sps:$4 sm:$0xff]   ;;  %v2130_v10 = vld [vmem:[#allocation8 + $0xac] ss:$12 sps:$4 sm:$0xff]   ;;  %v2135_v13 = vld [vmem:[#allocation8 + $0x90] ss:$12 sps:$4 sm:$0xff]  }
  0x5b   :  { %v2132_v11 = vld [vmem:[#allocation8 + $0xa8] ss:$12 sps:$4 sm:$0xff]   ;;  %910 = vmatprep.subr.bf16.mxu0 %v2130_v10  ;;  %v2138_v15 = vld [vmem:[#allocation8 + $0x78] ss:$12 sps:$4 sm:$0xff]   ;;  %v2141_v17 = vld [vmem:[#allocation8 + $0x60] ss:$12 sps:$4 sm:$0xff]  }
  0x5c   :  { %911 = vmatpush1.bf16.msra.mxu0 %v2132_v11  ;;  %v2133_v12 = vld [vmem:[#allocation8 + $0x94] ss:$12 sps:$4 sm:$0xff]   ;;  %v2136_v14 = vld [vmem:[#allocation8 + $0x7c] ss:$12 sps:$4 sm:$0xff]   ;;  %v2139_v16 = vld [vmem:[#allocation8 + $0x64] ss:$12 sps:$4 sm:$0xff]  }
  0x5d   :  { %219 = vmatpush1.bf16.msra.mxu1 %v2127_v4  ;;  %912 = vmatprep.subr.bf16.mxu0 %v2133_v12  ;;  %v2142_v18 = vld [vmem:[#allocation8 + $0x4c] ss:$12 sps:$4 sm:$0xff]   ;;  %v2144_v19 = vld [vmem:[#allocation8 + $0x48] ss:$12 sps:$4 sm:$0xff]   ;;  %v2147_v21 = vld [vmem:[#allocation8 + $0x30] ss:$12 sps:$4 sm:$0xff]  }
  0x5e   :  { %2076 = vmatprep.subr.bf16.mxu1 %v2522_v8  ;;  %v2145_v20 = vld [vmem:[#allocation8 + $0x34] ss:$12 sps:$4 sm:$0xff]   ;;  %v2148_v22 = vld [vmem:[#allocation8 + $0x1c] ss:$12 sps:$4 sm:$0xff]   ;;  %v2150_v23 = vld [vmem:[#allocation8 + $0x18] ss:$12 sps:$4 sm:$0xff]  }
  0x5f   :  { %v2151_v24 = vld [vmem:[#allocation8 + $0x4] ss:$12 sps:$4 sm:$0xff]   ;;  %v2153_v25 = vld [vmem:[#allocation8] ss:$12 sps:$4 sm:$0xff]   ;;  %v2154_v27 = vld [vmem:[#allocation8 + $0x228] ss:$12 sps:$4 sm:$0xff]  }
  0x60   :  { %1879 = vmatmul.mubr.msk.bf16.vlgmr.msra.gmra.mxu1 %vm200_vm0, %v142_v7  ;;  %913 = vmatpush1.bf16.msra.mxu0 %v2135_v13  ;;  %v2156_v26 = vld [vmem:[#allocation8 + $0x22c] ss:$12 sps:$4 sm:$0xff]   ;;  %v2159_v29 = vld [vmem:[#allocation8 + $0x168] ss:$12 sps:$4 sm:$0xff]   ;;  %v2160_v31 = vld [vmem:[#allocation8 + $0x210] ss:$12 sps:$4 sm:$0xff]  }
  0x61   :  { %2077 = vmatpush3.bf16.msra.mxu1 %v2128_v6  ;;  %2080 = vmatprep.mubr.msk.bf16.mxu1 %vm2523_vm1, %v2522_v8  ;;  %v2157_v28 = vld [vmem:[#allocation8 + $0x16c] ss:$12 sps:$4 sm:$0xff]   ;;  %v2162_v30 = vld [vmem:[#allocation8 + $0x214] ss:$12 sps:$4 sm:$0xff]   ;;  %v2165_v33 = vld [vmem:[#allocation8 + $0x150] ss:$12 sps:$4 sm:$0xff]  }
  0x62   :  { %2078 = vmatprep.subr.bf16.mxu1 %v2522_v8  ;;  %914 = vmatprep.subr.bf16.mxu0 %v2136_v14  ;;  %v2163_v32 = vld [vmem:[#allocation8 + $0x154] ss:$12 sps:$4 sm:$0xff]   ;;  %v2168_v34 = vld [vmem:[#allocation8 + $0x1fc] ss:$12 sps:$4 sm:$0xff]   ;;  %v2166_v35 = vld [vmem:[#allocation8 + $0x1f8] ss:$12 sps:$4 sm:$0xff]  }
  0x63   :  { %v2169_v36 = vld [vmem:[#allocation8 + $0x13c] ss:$12 sps:$4 sm:$0xff]   ;;  %v2171_v37 = vld [vmem:[#allocation8 + $0x138] ss:$12 sps:$4 sm:$0xff]   ;;  %v2172_v39 = vld [vmem:[#allocation8 + $0x1e0] ss:$12 sps:$4 sm:$0xff]  }
  0x64   :  { %915 = vmatpush1.bf16.msra.mxu0 %v2138_v15  ;;  %v2174_v38 = vld [vmem:[#allocation8 + $0x1e4] ss:$12 sps:$4 sm:$0xff]   ;;  %v2177_v41 = vld [vmem:[#allocation8 + $0x120] ss:$12 sps:$4 sm:$0xff]   ;;  %v2178_v43 = vld [vmem:[#allocation8 + $0x1c8] ss:$12 sps:$4 sm:$0xff]  }
  0x65   :  { %2079 = vmatpush3.bf16.msra.mxu1 %v2129_v9  ;;  %916 = vmatprep.subr.bf16.mxu0 %v2139_v16  ;;  %v2175_v40 = vld [vmem:[#allocation8 + $0x124] ss:$12 sps:$4 sm:$0xff]   ;;  %v2180_v42 = vld [vmem:[#allocation8 + $0x1cc] ss:$12 sps:$4 sm:$0xff]   ;;  %v2183_v45 = vld [vmem:[#allocation8 + $0x108] ss:$12 sps:$4 sm:$0xff]  }
  0x66   :  { %951 = vmatprep.subr.bf16.mxu1 %v2156_v26  ;;  %v2181_v44 = vld [vmem:[#allocation8 + $0x10c] ss:$12 sps:$4 sm:$0xff]   ;;  %v2186_v46 = vld [vmem:[#allocation8 + $0x1b4] ss:$12 sps:$4 sm:$0xff]   ;;  %v2184_v47 = vld [vmem:[#allocation8 + $0x1b0] ss:$12 sps:$4 sm:$0xff]  }
  0x67   :  { %v2187_v48 = vld [vmem:[#allocation8 + $0xf4] ss:$12 sps:$4 sm:$0xff]   ;;  %v2189_v49 = vld [vmem:[#allocation8 + $0xf0] ss:$12 sps:$4 sm:$0xff]   ;;  %v2190_v51 = vld [vmem:[#allocation8 + $0x198] ss:$12 sps:$4 sm:$0xff]  }
  0x68   :  { %2081 = vmatmul.mubr.msk.bf16.vlgmr.msra.gmra.mxu1 %vm200_vm0, %v142_v7  ;;  %917 = vmatpush1.bf16.msra.mxu0 %v2141_v17  ;;  %v2192_v50 = vld [vmem:[#allocation8 + $0x19c] ss:$12 sps:$4 sm:$0xff]   ;;  %v2195_v53 = vld [vmem:[#allocation8 + $0xd8] ss:$12 sps:$4 sm:$0xff]   ;;  %v2196_v55 = vld [vmem:[#allocation8 + $0x180] ss:$12 sps:$4 sm:$0xff]  }
  0x69   :  { %983 = vmatprep.mubr.bf16.mxu1 %v2521_v0  ;;  %918 = vmatprep.subr.bf16.mxu0 %v2142_v18  ;;  %v2193_v52 = vld [vmem:[#allocation8 + $0xdc] ss:$12 sps:$4 sm:$0xff]   ;;  %v2198_v54 = vld [vmem:[#allocation8 + $0x184] ss:$12 sps:$4 sm:$0xff]   ;;  %v2201_v57 = vld [vmem:[#allocation8 + $0xc0] ss:$12 sps:$4 sm:$0xff]  }
  0x6a   :  { %952 = vmatpush1.bf16.msra.mxu1 %v2154_v27  ;;  %v2199_v56 = vld [vmem:[#allocation8 + $0xc4] ss:$12 sps:$4 sm:$0xff]   ;;  %v2637_v61 = vsub.s32 0, %v2634_v60  ;;  %v2643_v63 = vsub.s32 1, %v2634_v60  ;;  %v2648_v5 = vsub.s32 2, %v2634_v60  ;;  %s2525_s30 = smov [#allocation14]  }
  0x6b   :  { %953 = vmatprep.subr.bf16.mxu1 %v2162_v30  ;;  %v2202_v58 = vld [vmem:[#allocation8 + $0x170] ss:$12 sps:$4 sm:$0xff]   ;;  %v151_v62 = vld [vmem:[%s2729_s2] sm:$0x7]  ;;  %s1861_s16 = sshll.u32 %s2525_s30, 4  ;;  %s1862_s16 = int_to_ptr.vmem [resolvable:$true] %s1861_s16 }
  0x6c   :  { %919 = vmatpush1.bf16.msra.mxu0 %v2144_v19  ;;  %v156_v1 = vrot.slane %v151_v62, %v2637_v61  ;;  %v160_v2 = vrot.slane %v151_v62, %v2643_v63  ;;  %v164_v13 = vrot.slane %v151_v62, %v2648_v5  ;;  %s2478_s17 = scalar_lea.vmem %s1862_s16, 128  ;;  %p2483_p8 = scmp.lt.s32.totalorder %s1862_s16, %s1862_s16 }
  0x6d   :  { %920 = vmatprep.subr.bf16.mxu0 %v2145_v20  ;;  %p2479_p7 = scmp.ne.s32.totalorder %s1862_s16, %s2478_s17  ;;  %p2484_p9 = scmp.lt.s32.totalorder %s2478_s17, %s2478_s17 }
  0x6e   :  { %954 = vmatpush1.bf16.msra.mxu1 %v2160_v31 }
  0x6f   :  { %955 = vmatprep.subr.bf16.mxu1 %v2168_v34  ;;  %p2485_p10 = por %p2484_p9, %p2483_p8 }
  0x70   :  { %921 = vmatpush1.bf16.msra.mxu0 %v2147_v21 }
  0x71   :  { %922 = vmatprep.subr.bf16.mxu0 %v2148_v22  ;;  %p2486_p11 = pnand %p2485_p10, %p2479_p7 }
  0x72   :  { %956 = vmatpush1.bf16.msra.mxu1 %v2166_v35 }
  0x73   :  { %957 = vmatprep.subr.bf16.mxu1 %v2174_v38 }
  0x74   :  { %923 = vmatpush1.bf16.msra.mxu0 %v2150_v23 }
  0x75   :  { %924 = vmatprep.subr.bf16.mxu0 %v2151_v24 }
  0x76   :  { %958 = vmatpush1.bf16.msra.mxu1 %v2172_v39 }
  0x77   :  { %959 = vmatprep.subr.bf16.mxu1 %v2180_v42 }
  0x78   :  { %925 = vmatpush1.bf16.msra.mxu0 %v2153_v25 }
  0x79   :  { %926 = vmatprep.subr.bf16.mxu0 %v2157_v28 }
  0x7a   :  { %960 = vmatpush1.bf16.msra.mxu1 %v2178_v43 }
  0x7b   :  { %961 = vmatprep.subr.bf16.mxu1 %v2186_v46 }
  0x7c   :  { %927 = vmatpush2.bf16.msra.mxu0 %v2159_v29 }
  0x7d   :  { %928 = vmatprep.subr.bf16.mxu0 %v2163_v32 }
  0x7e   :  { %962 = vmatpush1.bf16.msra.mxu1 %v2184_v47 }
  0x7f   :  { %963 = vmatprep.subr.bf16.mxu1 %v2192_v50 }
  0x80   :  { %929 = vmatpush2.bf16.msra.mxu0 %v2165_v33 }
  0x81   :  { %930 = vmatprep.subr.bf16.mxu0 %v2169_v36 }
  0x82   :  { %964 = vmatpush1.bf16.msra.mxu1 %v2190_v51 }
  0x83   :  { %965 = vmatprep.subr.bf16.mxu1 %v2198_v54 }
  0x84   :  { %931 = vmatpush2.bf16.msra.mxu0 %v2171_v37 }
  0x85   :  { %932 = vmatprep.subr.bf16.mxu0 %v2175_v40 }
  0x86   :  { %966 = vmatpush1.bf16.msra.mxu1 %v2196_v55 }
  0x87   :  { %2023 = vmatprep.subr.bf16.mxu1 %v2202_v58 }
  0x88   :  { %933 = vmatpush2.bf16.msra.mxu0 %v2177_v41 }
  0x89   :  { %934 = vmatprep.subr.bf16.mxu0 %v2181_v44 }
  0x8c   :  { %935 = vmatpush2.bf16.msra.mxu0 %v2183_v45 }
  0x8d   :  { %936 = vmatprep.subr.bf16.mxu0 %v2187_v48 }
  0x90   :  { %937 = vmatpush2.bf16.msra.mxu0 %v2189_v49 }
  0x91   :  { %938 = vmatprep.subr.bf16.mxu0 %v2193_v52 }
  0x94   :  { %939 = vmatpush2.bf16.msra.mxu0 %v2195_v53 }
  0x95   :  { %940 = vmatprep.subr.bf16.mxu0 %v2199_v56 }
  0x98   :  { %941 = vmatpush2.bf16.msra.mxu0 %v2201_v57 }
  0x99   :  { %2084 = vmatprep.subr.bf16.mxu0 %v2522_v8 }
 0x120   :  { %v238_v3 = vpop.f32.mrf.mxu1 }
 0x121   :  { %v239_v4 = vadd.f32 %v238_v3, %v156_v1 }
 0x122   :  { %v240_v6 = vpop.f32.mrf.mxu1 }
 0x123   :  { %v285_v7 = vmax.f32 %v239_v4, 0.0  ;;  %v241_v9 = vadd.f32 %v240_v6, %v160_v2 }
 0x124   :  { %v242_v10 = vpop.f32.mrf.mxu1 }
 0x125   :  { %v290_v11 = vrot.slane %v285_v7, 4  ;;  %v286_v12 = vmax.f32 %v241_v9, 0.0 }
 0x126   :  { %v243_v14 = vpop.f32.mrf.mxu1 }
 0x127   :  { %v291_v15 = vadd.f32 %v290_v11, %v285_v7  ;;  %v296_v16 = vrot.slane %v286_v12, 4 }
 0x128   :  { %v279_v17 = vpop.f32.mrf.mxu1 }
 0x129   :  { %v292_v18 = vrot.slane %v291_v15, 2  ;;  %v297_v19 = vadd.f32 %v296_v16, %v286_v12  ;;  %v280_v20 = vadd.f32 %v279_v17, %v164_v13  ;;  %v2524_v13 = vmov 1966171168  }
 0x12a   :  { %v2082_v21 = vpop.f32.mrf.mxu1  ;;  %v349_v14 = vunpack.c.l.s4 %v2524_v13  ;;  %v2237_v13 = vld [vmem:[#allocation11 + $0x44] ss:$8 sps:$4 sm:$0xff]  }
 0x12b   :  { %v293_v22 = vadd.f32 %v292_v18, %v291_v15  ;;  %v298_v23 = vrot.slane %v297_v19, 2  ;;  %v287_v24 = vmax.f32 %v280_v20, 0.0 }
 0x12c   :  { %v282_v25 = vpop.f32.mrf.mxu1  ;;  %v350_v15 = vunpack.c.0.s8 %v349_v14  ;;  %v2240_v14 = vld [vmem:[#allocation11 + $0x34] ss:$8 sps:$4 sm:$0xff]  }
 0x12d   :  { %v294_v26 = vrot.slane %v293_v22, 1  ;;  %v299_v27 = vadd.f32 %v298_v23, %v297_v19  ;;  %v302_v28 = vrot.slane %v287_v24, 4 }
 0x12e   :  { %v2083_v29 = vpop.f32.mrf.mxu1  ;;  %v2652_v19 = vsub.s32 %v350_v15, %v2634_v60  ;;  %v2238_v15 = vld [vmem:[#allocation11 + $0x30] ss:$8 sps:$4 sm:$0xff]  }
 0x12f   :  { %v295_v30 = vadd.f32 %v294_v26, %v293_v22  ;;  %v300_v31 = vrot.slane %v299_v27, 1  ;;  %v303_v32 = vadd.f32 %v302_v28, %v287_v24  ;;  %v289_v26 = vld [vmem:[%s2731_s4] sm:$0x7] }
 0x130   :  { %v399_v28 = vrot.slane %v289_v26, %v2643_v63  ;;  %v403_v29 = vrot.slane %v289_v26, %v2648_v5 }
 0x131   :  { %v308_v33 = vmul.f32 0.125, %v295_v30  ;;  %v301_v34 = vadd.f32 %v300_v31, %v299_v27  ;;  %v304_v35 = vrot.slane %v303_v32, 2 }
 0x133   :  { %v311_v36 = vsub.f32 %v285_v7, %v308_v33  ;;  %v309_v37 = vmul.f32 0.125, %v301_v34  ;;  %v305_v38 = vadd.f32 %v304_v35, %v303_v32  ;;  %v395_v32 = vrot.slane %v289_v26, %v2637_v61  ;;  %v2256_v26 = vld [vmem:[#allocation11 + $0x160] ss:$8 sps:$4 sm:$0xff]  }
 0x135   :  { %v314_v39 = vmul.f32 %v311_v36, %v311_v36  ;;  %v312_v40 = vsub.f32 %v286_v12, %v309_v37  ;;  %v306_v41 = vrot.slane %v305_v38, 1 }
 0x137   :  { %v317_v42 = vrot.slane %v314_v39, 4  ;;  %v315_v43 = vmul.f32 %v312_v40, %v312_v40  ;;  %v307_v44 = vadd.f32 %v306_v41, %v305_v38  ;;  %v2203_v41 = vld [vmem:[#allocation8 + $0xb0] ss:$12 sps:$4 sm:$0xff]  }
 0x139   :  { %v318_v45 = vadd.f32 %v317_v42, %v314_v39  ;;  %v323_v46 = vrot.slane %v315_v43, 4  ;;  %v310_v47 = vmul.f32 0.125, %v307_v44 }
 0x13b   :  { %v319_v48 = vrot.slane %v318_v45, 2  ;;  %v324_v49 = vadd.f32 %v323_v46, %v315_v43  ;;  %v313_v50 = vsub.f32 %v287_v24, %v310_v47  ;;  %v288_v24 = vld [vmem:[#allocation7] sm:$0x7]  ;;  %v2205_v46 = vld [vmem:[#allocation8 + $0x158] ss:$12 sps:$4 sm:$0xff]  }
 0x13c   :  { %v2206_v47 = vld [vmem:[#allocation8 + $0x98] ss:$12 sps:$4 sm:$0xff]  }
 0x13d   :  { %v320_v51 = vadd.f32 %v319_v48, %v318_v45  ;;  %v325_v52 = vrot.slane %v324_v49, 2  ;;  %v316_v53 = vmul.f32 %v313_v50, %v313_v50  ;;  %v2204_v45 = vld [vmem:[#allocation8 + $0x230] ss:$12 sps:$4 sm:$0xff]   ;;  %v2207_v48 = vld [vmem:[#allocation8 + $0x218] ss:$12 sps:$4 sm:$0xff]  }
 0x13f   :  { %v321_v54 = vrot.slane %v320_v51, 1  ;;  %v326_v55 = vadd.f32 %v325_v52, %v324_v49  ;;  %v329_v56 = vrot.slane %v316_v53, 4  ;;  %v2208_v49 = vld [vmem:[#allocation8 + $0x140] ss:$12 sps:$4 sm:$0xff]   ;;  %v2213_v52 = vld [vmem:[#allocation8 + $0x1e8] ss:$12 sps:$4 sm:$0xff]  }
 0x141   :  { %v322_v57 = vadd.f32 %v321_v54, %v320_v51  ;;  %v327_v58 = vrot.slane %v326_v55, 1  ;;  %v330_v59 = vadd.f32 %v329_v56, %v316_v53  ;;  %v2212_v51 = vld [vmem:[#allocation8 + $0x68] ss:$12 sps:$4 sm:$0xff]   ;;  %v2214_v53 = vld [vmem:[#allocation8 + $0x110] ss:$12 sps:$4 sm:$0xff]  }
 0x142   :  { %v2215_v54 = vld [vmem:[#allocation8 + $0x50] ss:$12 sps:$4 sm:$0xff]   ;;  %v2217_v56 = vld [vmem:[#allocation8 + $0xf8] ss:$12 sps:$4 sm:$0xff]  }
 0x143   :  { %v335_v62 = vmul.f32 0.125, %v322_v57  ;;  %v328_v1 = vadd.f32 %v327_v58, %v326_v55  ;;  %v331_v2 = vrot.slane %v330_v59, 2  ;;  %v2216_v55 = vld [vmem:[#allocation8 + $0x1d0] ss:$12 sps:$4 sm:$0xff]   ;;  %v2218_v57 = vld [vmem:[#allocation8 + $0x38] ss:$12 sps:$4 sm:$0xff]  }
 0x144   :  { %v2219_v58 = vld [vmem:[#allocation8 + $0x1b8] ss:$12 sps:$4 sm:$0xff]  }
 0x145   :  { %v336_v3 = vmul.f32 0.125, %v328_v1  ;;  %v332_v4 = vadd.f32 %v331_v2, %v330_v59  ;;  %v338_v6 = vadd.f32 1e-05, %v335_v62  ;;  %v2220_v59 = vld [vmem:[#allocation8 + $0xe0] ss:$12 sps:$4 sm:$0xff]  }
 0x146   :  { %v2221_v62 = vld [vmem:[#allocation8 + $0x20] ss:$12 sps:$4 sm:$0xff]   ;;  %v2223_v2 = vld [vmem:[#allocation8 + $0xc8] ss:$12 sps:$4 sm:$0xff]  }
 0x147   :  { %v339_v7 = vadd.f32 1e-05, %v336_v3  ;;  %v333_v9 = vrot.slane %v332_v4, 1  ;;  %v2222_v1 = vld [vmem:[#allocation8 + $0x1a0] ss:$12 sps:$4 sm:$0xff]  }
 0x148   :  { %v2224_v3 = vld [vmem:[#allocation8 + $0x8] ss:$12 sps:$4 sm:$0xff]  }
 0x149   :  { %2314 = vrsqrt.f32 %v339_v7  ;;  %v334_v10 = vadd.f32 %v333_v9, %v332_v4  ;;  %v2225_v4 = vld [vmem:[#allocation8 + $0x188] ss:$12 sps:$4 sm:$0xff]  }
 0x14a   :  { %2316 = vrsqrt.f32 %v338_v6  ;;  %v2228_v6 = vld [vmem:[#allocation11 + $0x74] ss:$8 sps:$4 sm:$0xff]   ;;  %v2226_v7 = vld [vmem:[#allocation11 + $0x70] ss:$8 sps:$4 sm:$0xff]   ;;  %v2231_v9 = vld [vmem:[#allocation11 + $0x64] ss:$8 sps:$4 sm:$0xff]  }
 0x14b   :  { %v337_v11 = vmul.f32 0.125, %v334_v10  ;;  %v2229_v10 = vld [vmem:[#allocation11 + $0x60] ss:$8 sps:$4 sm:$0xff]  }
 0x14d   :  { %v340_v12 = vadd.f32 1e-05, %v337_v11  ;;  %v2234_v11 = vld [vmem:[#allocation11 + $0x54] ss:$8 sps:$4 sm:$0xff]  }
 0x14f   :  { %2318 = vrsqrt.f32 %v340_v12  ;;  %v2232_v12 = vld [vmem:[#allocation11 + $0x50] ss:$8 sps:$4 sm:$0xff]  }
 0x156   :  { %v2315_v16 = vpop.eup %2314 }
 0x157   :  { %v2317_v17 = vpop.eup %2316 }
 0x158   :  { %v347_v18 = vcombine.low %v2317_v17, %v2315_v16  ;;  %v2241_v16 = vld [vmem:[#allocation11 + $0x20] ss:$8 sps:$4 sm:$0xff]   ;;  %v2246_v17 = vld [vmem:[#allocation11 + $0x14] ss:$8 sps:$4 sm:$0xff]  }
 0x15a   :  { %v354_v21 = vrot.slane %v347_v18, %v2652_v19  ;;  %v2244_v18 = vld [vmem:[#allocation11 + $0x10] ss:$8 sps:$4 sm:$0xff]  }
 0x15c   :  { %v2319_v20 = vpop.eup %2318 }
 0x15d   :  { %v361_v22 = vrot.slane %v2319_v20, %v2652_v19  ;;  %v2249_v20 = vld [vmem:[#allocation11 + $0x4] ss:$8 sps:$4 sm:$0xff]  }
 0x15f   :  { %v362_v23 = vcombine.low %v354_v21, %v361_v22  ;;  %v2247_v21 = vld [vmem:[#allocation11] ss:$8 sps:$4 sm:$0xff]   ;;  %v2252_v22 = vld [vmem:[#allocation11 + $0x174] ss:$8 sps:$4 sm:$0xff]  }
 0x161   :  { %v369_v25 = vrot.slane %v362_v23, %v2652_v19  ;;  %v2250_v23 = vld [vmem:[#allocation11 + $0x170] ss:$8 sps:$4 sm:$0xff]  }
 0x163   :  { %v371_v27 = vmul.f32 %v369_v25, %v288_v24  ;;  %v2255_v24 = vld [vmem:[#allocation11 + $0xf4] ss:$8 sps:$4 sm:$0xff]   ;;  %v2253_v25 = vld [vmem:[#allocation11 + $0xf0] ss:$8 sps:$4 sm:$0xff]  }
 0x165   :  { %v384_v60 = vrot.slane %v371_v27, %v2648_v5  ;;  %v380_v30 = vrot.slane %v371_v27, %v2643_v63  ;;  %v376_v31 = vrot.slane %v371_v27, %v2637_v61  ;;  %v2258_v27 = vld [vmem:[#allocation11 + $0x164] ss:$8 sps:$4 sm:$0xff]  }
 0x167   :  { %v390_v33 = vmul.f32 %v384_v60, %v313_v50  ;;  %v389_v34 = vmul.f32 %v380_v30, %v312_v40  ;;  %v388_v35 = vmul.f32 %v376_v31, %v311_v36  ;;  %v2209_v36 = vld [vmem:[#allocation8 + $0x80] ss:$12 sps:$4 sm:$0xff]   ;;  %v2211_v50 = vld [vmem:[#allocation8 + $0x128] ss:$12 sps:$4 sm:$0xff]  }
 0x168   :  { %v2210_v40 = vld [vmem:[#allocation8 + $0x200] ss:$12 sps:$4 sm:$0xff]   ;;  %v2262_v31 = vld [vmem:[#allocation11 + $0x150] ss:$8 sps:$4 sm:$0xff]  }
 0x169   :  { %v408_v37 = vadd.f32 %v399_v28, %v389_v34  ;;  %v409_v38 = vadd.f32 %v403_v29, %v390_v33  ;;  %v407_v39 = vadd.f32 %v395_v32, %v388_v35  ;;  %v2259_v28 = vld [vmem:[#allocation11 + $0xe0] ss:$8 sps:$4 sm:$0xff]   ;;  %v2261_v29 = vld [vmem:[#allocation11 + $0xe4] ss:$8 sps:$4 sm:$0xff]   ;;  %v2264_v60 = vld [vmem:[#allocation11 + $0x154] ss:$8 sps:$4 sm:$0xff]  }
 0x16a   :  { %v2267_v30 = vld [vmem:[#allocation11 + $0xd4] ss:$8 sps:$4 sm:$0xff]   ;;  %v2265_v32 = vld [vmem:[#allocation11 + $0xd0] ss:$8 sps:$4 sm:$0xff]   ;;  %v2270_v33 = vld [vmem:[#allocation11 + $0x144] ss:$8 sps:$4 sm:$0xff]  }
 0x16b   :  { %v411_v42 = vpack.c.bf16 %v408_v37, %v408_v37  ;;  %v412_v43 = vpack.c.bf16 %v409_v38, %v409_v38  ;;  %v410_v44 = vpack.c.bf16 %v407_v39, %v407_v39  ;;  %v2273_v34 = vld [vmem:[#allocation11 + $0xc4] ss:$8 sps:$4 sm:$0xff]   ;;  %v2268_v35 = vld [vmem:[#allocation11 + $0x140] ss:$8 sps:$4 sm:$0xff]   ;;  %v2276_v38 = vld [vmem:[#allocation11 + $0x134] ss:$8 sps:$4 sm:$0xff]  }
 0x16c   :  { %v2271_v37 = vld [vmem:[#allocation11 + $0xc0] ss:$8 sps:$4 sm:$0xff]   ;;  %v2279_v39 = vld [vmem:[#allocation11 + $0xb4] ss:$8 sps:$4 sm:$0xff]  }
 0x16d   :  { %942 = vmatprep.mubr.bf16.mxu0 %v411_v42  ;;  %984 = vmatmul.mubr.bf16.vlgmr.msra.gmra.mxu1 %v412_v43 }
 0x16e   :  { %2024 = vmatpush3.bf16.msra.mxu1 %v2203_v41  ;;  %943 = vmatmul.mubr.bf16.vlgmr.msra.gmra.mxu0 %v410_v44  ;;  %v2274_v41 = vld [vmem:[#allocation11 + $0x130] ss:$8 sps:$4 sm:$0xff]  }
 0x16f   :  { %1024 = vmatprep.mubr.bf16.mxu1 %v411_v42  ;;  %2085 = vmatpush3.bf16.msra.mxu0 %v2204_v45  ;;  %v2277_v42 = vld [vmem:[#allocation11 + $0xb0] ss:$8 sps:$4 sm:$0xff]   ;;  %v2280_v45 = vld [vmem:[#allocation11 + $0x120] ss:$8 sps:$4 sm:$0xff]  }
 0x170   :  { %2025 = vmatprep.subr.bf16.mxu1 %v2205_v46  ;;  %2086 = vmatprep.subr.bf16.mxu0 %v2522_v8  ;;  %v2283_v46 = vld [vmem:[#allocation11 + $0xa0] ss:$8 sps:$4 sm:$0xff]  }
 0x171   :  { %2100 = vmatprep.mubr.msk.bf16.mxu0 %vm2523_vm1, %v2522_v8 }
 0x172   :  { %2026 = vmatpush3.bf16.msra.mxu1 %v2206_v47  ;;  %v2288_v47 = vld [vmem:[#allocation11 + $0x114] ss:$8 sps:$4 sm:$0xff]  }
 0x173   :  { %2087 = vmatpush3.bf16.msra.mxu0 %v2207_v48  ;;  %2027 = vmatprep.subr.bf16.mxu1 %v2208_v49  ;;  %v2291_v48 = vld [vmem:[#allocation11 + $0x94] ss:$8 sps:$4 sm:$0xff]   ;;  %v2286_v49 = vld [vmem:[#allocation11 + $0x110] ss:$8 sps:$4 sm:$0xff]  }
 0x174   :  { %2088 = vmatprep.subr.bf16.mxu0 %v2522_v8 }
 0x176   :  { %2028 = vmatpush3.bf16.msra.mxu1 %v2209_v36  ;;  %v2289_v36 = vld [vmem:[#allocation11 + $0x90] ss:$8 sps:$4 sm:$0xff]  }
 0x177   :  { %2089 = vmatpush3.bf16.msra.mxu0 %v2210_v40  ;;  %2029 = vmatprep.subr.bf16.mxu1 %v2211_v50  ;;  %v2294_v40 = vld [vmem:[#allocation11 + $0x104] ss:$8 sps:$4 sm:$0xff]  }
 0x178   :  { %2090 = vmatprep.subr.bf16.mxu0 %v2522_v8  ;;  %v2297_v50 = vld [vmem:[#allocation11 + $0x84] ss:$8 sps:$4 sm:$0xff]  }
 0x17a   :  { %2030 = vmatpush3.bf16.msra.mxu1 %v2212_v51  ;;  %v2292_v51 = vld [vmem:[#allocation11 + $0x100] ss:$8 sps:$4 sm:$0xff]  }
 0x17b   :  { %2091 = vmatpush3.bf16.msra.mxu0 %v2213_v52  ;;  %2031 = vmatprep.subr.bf16.mxu1 %v2214_v53  ;;  %v2295_v52 = vld [vmem:[#allocation11 + $0x80] ss:$8 sps:$4 sm:$0xff]  }
 0x17c   :  { %2092 = vmatprep.subr.bf16.mxu0 %v2522_v8  ;;  %v509_v53 = vld [vmem:[%s2733_s6] sm:$0x7] }
 0x17e   :  { %2032 = vmatpush3.bf16.msra.mxu1 %v2215_v54  ;;  %v514_v54 = vrot.slane %v509_v53, %v2637_v61 }
 0x17f   :  { %2093 = vmatpush3.bf16.msra.mxu0 %v2216_v55  ;;  %2033 = vmatprep.subr.bf16.mxu1 %v2217_v56  ;;  %v518_v56 = vrot.slane %v509_v53, %v2643_v63 }
 0x180   :  { %2094 = vmatprep.subr.bf16.mxu0 %v2522_v8 }
 0x182   :  { %2034 = vmatpush3.bf16.msra.mxu1 %v2218_v57 }
 0x183   :  { %2095 = vmatpush3.bf16.msra.mxu0 %v2219_v58  ;;  %2035 = vmatprep.subr.bf16.mxu1 %v2220_v59 }
 0x184   :  { %2096 = vmatprep.subr.bf16.mxu0 %v2522_v8 }
 0x186   :  { %2036 = vmatpush3.bf16.msra.mxu1 %v2221_v62 }
 0x187   :  { %2097 = vmatpush3.bf16.msra.mxu0 %v2222_v1  ;;  %2037 = vmatprep.subr.bf16.mxu1 %v2223_v2 }
 0x188   :  { %2098 = vmatprep.subr.bf16.mxu0 %v2522_v8  ;;  %v2235_v8 = vld [vmem:[#allocation11 + $0x40] ss:$8 sps:$4 sm:$0xff]  }
 0x18a   :  { %2038 = vmatpush3.bf16.msra.mxu1 %v2224_v3 }
 0x18b   :  { %2099 = vmatpush3.bf16.msra.mxu0 %v2225_v4  ;;  %1500 = vmatprep.subr.bf16.mxu1 %v2228_v6 }
 0x18c   :  { %1541 = vmatprep.subr.bf16.mxu0 %v2252_v22 }
 0x18d   :  { %1025 = vmatmul.mubr.bf16.vlgmr.msra.gmra.mxu1 %v410_v44  ;;  %v2285_v44 = vld [vmem:[#allocation11 + $0xa4] ss:$8 sps:$4 sm:$0xff]  }
 0x18e   :  { %2101 = vmatmul.mubr.bf16.vlgmr.msra.gmra.mxu0 %v412_v43  ;;  %1501 = vmatpush1.bf16.msra.mxu1 %v2226_v7  ;;  %v2282_v43 = vld [vmem:[#allocation11 + $0x124] ss:$8 sps:$4 sm:$0xff]  }
 0x18f   :  { %1573 = vmatprep.mubr.bf16.mxu0 %v2521_v0  ;;  %1502 = vmatprep.subr.bf16.mxu1 %v2231_v9  ;;  %v2243_v0 = vld [vmem:[#allocation11 + $0x24] ss:$8 sps:$4 sm:$0xff]  }
 0x190   :  { %1542 = vmatpush1.bf16.msra.mxu0 %v2250_v23 }
 0x191   :  { %1543 = vmatprep.subr.bf16.mxu0 %v2258_v27 }
 0x192   :  { %1503 = vmatpush1.bf16.msra.mxu1 %v2229_v10 }
 0x193   :  { %1504 = vmatprep.subr.bf16.mxu1 %v2234_v11 }
 0x194   :  { %1544 = vmatpush1.bf16.msra.mxu0 %v2256_v26 }
 0x195   :  { %1545 = vmatprep.subr.bf16.mxu0 %v2264_v60 }
 0x196   :  { %1505 = vmatpush1.bf16.msra.mxu1 %v2232_v12 }
 0x197   :  { %1506 = vmatprep.subr.bf16.mxu1 %v2237_v13 }
 0x198   :  { %1546 = vmatpush1.bf16.msra.mxu0 %v2262_v31 }
 0x199   :  { %1547 = vmatprep.subr.bf16.mxu0 %v2270_v33 }
 0x19a   :  { %1507 = vmatpush1.bf16.msra.mxu1 %v2235_v8 }
 0x19b   :  { %1508 = vmatprep.subr.bf16.mxu1 %v2240_v14 }
 0x19c   :  { %1548 = vmatpush1.bf16.msra.mxu0 %v2268_v35 }
 0x19d   :  { %1549 = vmatprep.subr.bf16.mxu0 %v2276_v38 }
 0x19e   :  { %1509 = vmatpush1.bf16.msra.mxu1 %v2238_v15 }
 0x19f   :  { %1510 = vmatprep.subr.bf16.mxu1 %v2243_v0 }
 0x1a0   :  { %1550 = vmatpush1.bf16.msra.mxu0 %v2274_v41 }
 0x1a1   :  { %1551 = vmatprep.subr.bf16.mxu0 %v2282_v43 }
 0x1a2   :  { %1511 = vmatpush1.bf16.msra.mxu1 %v2241_v16 }
 0x1a3   :  { %1512 = vmatprep.subr.bf16.mxu1 %v2246_v17 }
 0x1a4   :  { %1552 = vmatpush1.bf16.msra.mxu0 %v2280_v45 }
 0x1a5   :  { %1553 = vmatprep.subr.bf16.mxu0 %v2288_v47 }
 0x1a6   :  { %1513 = vmatpush1.bf16.msra.mxu1 %v2244_v18 }
 0x1a7   :  { %1514 = vmatprep.subr.bf16.mxu1 %v2249_v20 }
 0x1a8   :  { %1554 = vmatpush1.bf16.msra.mxu0 %v2286_v49 }
 0x1a9   :  { %1555 = vmatprep.subr.bf16.mxu0 %v2294_v40 }
 0x1aa   :  { %1515 = vmatpush1.bf16.msra.mxu1 %v2247_v21 }
 0x1ab   :  { %1516 = vmatprep.subr.bf16.mxu1 %v2255_v24 }
 0x1ac   :  { %1556 = vmatpush1.bf16.msra.mxu0 %v2292_v51 }
 0x1ae   :  { %1517 = vmatpush2.bf16.msra.mxu1 %v2253_v25 }
 0x1af   :  { %1518 = vmatprep.subr.bf16.mxu1 %v2261_v29  ;;  %v522_v29 = vrot.slane %v509_v53, %v2648_v5 }
 0x1b2   :  { %1519 = vmatpush2.bf16.msra.mxu1 %v2259_v28 }
 0x1b3   :  { %1520 = vmatprep.subr.bf16.mxu1 %v2267_v30 }
 0x1b6   :  { %1521 = vmatpush2.bf16.msra.mxu1 %v2265_v32 }
 0x1b7   :  { %1522 = vmatprep.subr.bf16.mxu1 %v2273_v34 }
 0x1ba   :  { %1523 = vmatpush2.bf16.msra.mxu1 %v2271_v37 }
 0x1bb   :  { %1524 = vmatprep.subr.bf16.mxu1 %v2279_v39 }
 0x1be   :  { %1525 = vmatpush2.bf16.msra.mxu1 %v2277_v42 }
 0x1bf   :  { %1526 = vmatprep.subr.bf16.mxu1 %v2285_v44 }
 0x1c2   :  { %1527 = vmatpush2.bf16.msra.mxu1 %v2283_v46 }
 0x1c3   :  { %1528 = vmatprep.subr.bf16.mxu1 %v2291_v48 }
 0x1c6   :  { %1529 = vmatpush2.bf16.msra.mxu1 %v2289_v36 }
 0x1c7   :  { %1530 = vmatprep.subr.bf16.mxu1 %v2297_v50 }
 0x1ca   :  { %1531 = vmatpush2.bf16.msra.mxu1 %v2295_v52 }
 0x22d   :  { %v985_v55 = vpop.f32.mrf.mxu1 }
 0x22e   :  { %v944_v57 = vpop.f32.mrf.mxu0 }
 0x22f   :  { %v945_v58 = vadd.f32 %v944_v57, %v514_v54  ;;  %v987_v59 = vpop.f32.mrf.mxu1 }
 0x230   :  { %v946_v62 = vpop.f32.mrf.mxu0 }
 0x231   :  { %v986_v1 = vadd.f32 %v985_v55, %v945_v58  ;;  %v947_v2 = vadd.f32 %v946_v62, %v518_v56  ;;  %v989_v3 = vpop.f32.mrf.mxu1 }
 0x232   :  { %v948_v4 = vpop.f32.mrf.mxu0 }
 0x233   :  { %v1072_v6 = vmax.f32 %v986_v1, 0.0  ;;  %v988_v7 = vadd.f32 %v987_v59, %v947_v2  ;;  %v990_v9 = vpop.f32.mrf.mxu1 }
 0x234   :  { %v949_v10 = vpop.f32.mrf.mxu0 }
 0x235   :  { %v1077_v11 = vrot.slane %v1072_v6, 4  ;;  %v1073_v12 = vmax.f32 %v988_v7, 0.0 }
 0x237   :  { %v1078_v13 = vadd.f32 %v1077_v11, %v1072_v6  ;;  %v1083_v8 = vrot.slane %v1073_v12, 4 }
 0x239   :  { %v1084_v14 = vadd.f32 %v1083_v8, %v1073_v12  ;;  %v1079_v15 = vrot.slane %v1078_v13, 2 }
 0x23b   :  { %v1085_v0 = vrot.slane %v1084_v14, 2  ;;  %v1080_v17 = vadd.f32 %v1079_v15, %v1078_v13 }
 0x23d   :  { %v1086_v16 = vadd.f32 %v1085_v0, %v1084_v14  ;;  %v1081_v20 = vrot.slane %v1080_v17, 1 }
 0x23f   :  { %v1087_v18 = vrot.slane %v1086_v16, 1  ;;  %v1082_v22 = vadd.f32 %v1081_v20, %v1080_v17 }
 0x241   :  { %v1088_v21 = vadd.f32 %v1087_v18, %v1086_v16  ;;  %v1095_v24 = vmul.f32 0.125, %v1082_v22  ;;  %v1075_v22 = vld [vmem:[%s2734_s7] sm:$0x7] }
 0x243   :  { %v1096_v23 = vmul.f32 0.125, %v1088_v21  ;;  %v2683_v27 = vsub.f32 %v1072_v6, %v1095_v24 }
 0x245   :  { %v2681_v25 = vsub.f32 %v1073_v12, %v1096_v23  ;;  %v1101_v34 = vmul.f32 %v2683_v27, %v2683_v27  ;;  %v1076_v23 = vld [vmem:[#allocation10] sm:$0x7] }
 0x247   :  { %v1102_v30 = vmul.f32 %v2681_v25, %v2681_v25  ;;  %v1104_v43 = vrot.slane %v1101_v34, 4 }
 0x249   :  { %v1110_v39 = vrot.slane %v1102_v30, 4  ;;  %v1105_v47 = vadd.f32 %v1104_v43, %v1101_v34 }
 0x24b   :  { %v1111_v45 = vadd.f32 %v1110_v39, %v1102_v30  ;;  %v1106_v40 = vrot.slane %v1105_v47, 2 }
 0x24d   :  { %v2039_v26 = vpop.f32.mrf.mxu1  ;;  %v1112_v49 = vrot.slane %v1111_v45, 2  ;;  %v1107_v53 = vadd.f32 %v1106_v40, %v1105_v47  ;;  %v2303_v47 = vld [vmem:[#allocation13 + $0x28] sm:$0xff]   ;;  %v2308_v40 = vld [vmem:[#allocation13 + $0x50] sm:$0xff]  }
 0x24e   :  { %v1066_v28 = vpop.f32.mrf.mxu0 }
 0x24f   :  { %v2040_v60 = vpop.f32.mrf.mxu1  ;;  %v1113_v51 = vadd.f32 %v1112_v49, %v1111_v45  ;;  %v1108_v57 = vrot.slane %v1107_v53, 1  ;;  %v2300_v45 = vld [vmem:[#allocation13 + $0x70] sm:$0xff]   ;;  %v2306_v49 = vld [vmem:[#allocation13 + $0x58] sm:$0xff]  }
 0x250   :  { %v2041_v31 = vadd.f32 %v2040_v60, %v2039_v26  ;;  %v2102_v32 = vpop.f32.mrf.mxu0 }
 0x251   :  { %v2042_v33 = vpop.f32.mrf.mxu1  ;;  %v1114_v55 = vrot.slane %v1113_v51, 1  ;;  %v1109_v1 = vadd.f32 %v1108_v57, %v1107_v53  ;;  %v1182_v32 = vrot.slane %v1076_v23, %v2637_v61  ;;  %v2312_v53 = vld [vmem:[#allocation13 + $0x40] sm:$0xff]  }
 0x252   :  { %v1027_v35 = vadd.f32 %v2041_v31, %v522_v29  ;;  %v1069_v37 = vpop.f32.mrf.mxu0  ;;  %v1190_v29 = vrot.slane %v1076_v23, %v2648_v5 }
 0x253   :  { %v2043_v38 = vpop.f32.mrf.mxu1  ;;  %v1115_v59 = vadd.f32 %v1114_v55, %v1113_v51  ;;  %v1122_v6 = vmul.f32 0.125, %v1109_v1  ;;  %v2310_v51 = vld [vmem:[#allocation13 + $0x48] sm:$0xff]   ;;  %v1248_v55 = vld [vmem:[%s2737_s10] sm:$0x3] }
 0x254   :  { %v1067_v41 = vadd.f32 %v1066_v28, %v1027_v35  ;;  %v2103_v42 = vpop.f32.mrf.mxu0  ;;  %v1186_v28 = vrot.slane %v1076_v23, %v2643_v63 }
 0x255   :  { %v1123_v3 = vmul.f32 0.125, %v1115_v59  ;;  %v1125_v11 = vadd.f32 1e-05, %v1122_v6 }
 0x256   :  { %v1074_v44 = vmax.f32 %v1067_v41, 0.0 }
 0x257   :  { %v1126_v9 = vadd.f32 1e-05, %v1123_v3 }
 0x258   :  { %v1089_v46 = vrot.slane %v1074_v44, 4 }
 0x259   :  { %2320 = vrsqrt.f32 %v1126_v9 }
 0x25a   :  { %v1090_v48 = vadd.f32 %v1089_v46, %v1074_v44  ;;  %2322 = vrsqrt.f32 %v1125_v11  ;;  %v2301_v46 = vld [vmem:[#allocation13 + $0x30] sm:$0xff]  }
 0x25c   :  { %v1091_v36 = vrot.slane %v1090_v48, 2 }
 0x25e   :  { %v1092_v50 = vadd.f32 %v1091_v36, %v1090_v48  ;;  %v2305_v48 = vld [vmem:[#allocation13 + $0x20] sm:$0xff]   ;;  %v2307_v36 = vld [vmem:[#allocation13 + $0x18] sm:$0xff]  }
 0x260   :  { %v1093_v52 = vrot.slane %v1092_v50, 1 }
 0x262   :  { %v1094_v54 = vadd.f32 %v1093_v52, %v1092_v50  ;;  %v2309_v50 = vld [vmem:[#allocation13 + $0x10] sm:$0xff]   ;;  %v2311_v52 = vld [vmem:[#allocation13 + $0x8] sm:$0xff]  }
 0x264   :  { %v1097_v56 = vmul.f32 0.125, %v1094_v54  ;;  %v2313_v54 = vld [vmem:[#allocation13] sm:$0xff]  }
 0x266   :  { %v1100_v58 = vsub.f32 %v1074_v44, %v1097_v56  ;;  %v2321_v15 = vpop.eup %2320  ;;  %v2298_v44 = vld [vmem:[#allocation13 + $0x78] sm:$0xff]   ;;  %v1253_v56 = vrot.slane %v1248_v55, %v2637_v61 }
 0x267   :  { %v2323_v0 = vpop.eup %2322  ;;  %2054 = vmatprep.subr.bf16.mxu0 %v2298_v44 }
 0x268   :  { %v1103_v62 = vmul.f32 %v1100_v58, %v1100_v58  ;;  %v1134_v16 = vcombine.low %v2323_v0, %v2321_v15 }
 0x26a   :  { %v1116_v2 = vrot.slane %v1103_v62, 4  ;;  %v1141_v18 = vrot.slane %v1134_v16, %v2652_v19 }
 0x26c   :  { %v1117_v4 = vadd.f32 %v1116_v2, %v1103_v62 }
 0x26e   :  { %v1118_v7 = vrot.slane %v1117_v4, 2 }
 0x270   :  { %v1119_v10 = vadd.f32 %v1118_v7, %v1117_v4 }
 0x272   :  { %v1120_v12 = vrot.slane %v1119_v10, 1 }
 0x274   :  { %v1121_v13 = vadd.f32 %v1120_v12, %v1119_v10 }
 0x276   :  { %v1124_v8 = vmul.f32 0.125, %v1121_v13 }
 0x278   :  { %v1127_v14 = vadd.f32 1e-05, %v1124_v8 }
 0x27a   :  { %2324 = vrsqrt.f32 %v1127_v14 }
 0x287   :  { %v2325_v17 = vpop.eup %2324 }
 0x288   :  { %v1148_v20 = vrot.slane %v2325_v17, %v2652_v19 }
 0x28a   :  { %v1149_v21 = vcombine.low %v1141_v18, %v1148_v20 }
 0x28c   :  { %v1156_v24 = vrot.slane %v1149_v21, %v2652_v19 }
 0x28e   :  { %v1158_v26 = vmul.f32 %v1156_v24, %v1075_v22 }
 0x290   :  { %v1167_v60 = vrot.slane %v1158_v26, %v2643_v63  ;;  %v1171_v30 = vrot.slane %v1158_v26, %v2648_v5  ;;  %v1163_v31 = vrot.slane %v1158_v26, %v2637_v61  ;;  %v2299_v5 = vld [vmem:[#allocation13 + $0x38] sm:$0xff]  }
 0x292   :  { %v1176_v33 = vmul.f32 %v1167_v60, %v2681_v25  ;;  %v1177_v34 = vmul.f32 %v1171_v30, %v1100_v58  ;;  %v1175_v35 = vmul.f32 %v1163_v31, %v2683_v27  ;;  %v2302_v25 = vld [vmem:[#allocation13 + $0x68] sm:$0xff]   ;;  %v2304_v27 = vld [vmem:[#allocation13 + $0x60] sm:$0xff]   ;;  %v1257_v58 = vrot.slane %v1248_v55, %v2643_v63 }
 0x293   :  { %v1594_v55 = vld [vmem:[%s2738_s11] sm:$0x3] }
 0x294   :  { %v1195_v37 = vadd.f32 %v1186_v28, %v1176_v33  ;;  %v1196_v38 = vadd.f32 %v1190_v29, %v1177_v34  ;;  %v1194_v39 = vadd.f32 %v1182_v32, %v1175_v35 }
 0x296   :  { %v1198_v41 = vpack.c.bf16 %v1195_v37, %v1195_v37  ;;  %v1199_v42 = vpack.c.bf16 %v1196_v38, %v1196_v38  ;;  %v1197_v43 = vpack.c.bf16 %v1194_v39, %v1194_v39 }
 0x298   :  { %1532 = vmatprep.mubr.bf16.mxu1 %v1198_v41  ;;  %1574 = vmatmul.mubr.bf16.vlgmr.msra.gmra.mxu0 %v1199_v42 }
 0x299   :  { %1533 = vmatmul.mubr.bf16.vlgmr.msra.gmra.mxu1 %v1197_v43  ;;  %2055 = vmatpush3.bf16.msra.mxu0 %v2299_v5 }
 0x29a   :  { %2056 = vmatprep.subr.bf16.mxu0 %v2300_v45 }
 0x29d   :  { %2057 = vmatpush3.bf16.msra.mxu0 %v2301_v46 }
 0x29e   :  { %2058 = vmatprep.subr.bf16.mxu0 %v2302_v25 }
 0x2a1   :  { %2059 = vmatpush3.bf16.msra.mxu0 %v2303_v47 }
 0x2a2   :  { %2060 = vmatprep.subr.bf16.mxu0 %v2304_v27 }
 0x2a5   :  { %2061 = vmatpush3.bf16.msra.mxu0 %v2305_v48 }
 0x2a6   :  { %2062 = vmatprep.subr.bf16.mxu0 %v2306_v49 }
 0x2a9   :  { %2063 = vmatpush3.bf16.msra.mxu0 %v2307_v36 }
 0x2aa   :  { %2064 = vmatprep.subr.bf16.mxu0 %v2308_v40 }
 0x2ad   :  { %2065 = vmatpush3.bf16.msra.mxu0 %v2309_v50 }
 0x2ae   :  { %2066 = vmatprep.subr.bf16.mxu0 %v2310_v51 }
 0x2b1   :  { %2067 = vmatpush3.bf16.msra.mxu0 %v2311_v52 }
 0x2b2   :  { %2068 = vmatprep.subr.bf16.mxu0 %v2312_v53 }
 0x2b5   :  { %2069 = vmatpush3.bf16.msra.mxu0 %v2313_v54 }
 0x358   :  { %v1575_v57 = vpop.f32.mrf.mxu0 }
 0x359   :  { %v1534_v59 = vpop.f32.mrf.mxu1 }
 0x35a   :  { %v1535_v62 = vadd.f32 %v1534_v59, %v1253_v56  ;;  %v1577_v1 = vpop.f32.mrf.mxu0 }
 0x35b   :  { %v1536_v2 = vpop.f32.mrf.mxu1 }
 0x35c   :  { %v1576_v3 = vadd.f32 %v1575_v57, %v1535_v62  ;;  %v1537_v4 = vadd.f32 %v1536_v2, %v1257_v58  ;;  %v1579_v6 = vpop.f32.mrf.mxu0  ;;  %v1595_v57 = vld [vmem:[%s2739_s12] sm:$0x3] }
 0x35d   :  { %v1538_v7 = vpop.f32.mrf.mxu1  ;;  %v1668_v62 = vrot.slane %v1595_v57, %v2637_v61 }
 0x35e   :  { %v2001_v9 = vmul.f32 -1.442695, %v1576_v3  ;;  %v1578_v10 = vadd.f32 %v1577_v1, %v1537_v4  ;;  %v1580_v11 = vpop.f32.mrf.mxu0  ;;  %v1672_v1 = vrot.slane %v1595_v57, %v2643_v63 }
 0x35f   :  { %v1539_v12 = vpop.f32.mrf.mxu1  ;;  %v2003_v11 = vld [vmem:[%s2741_s14] ss:$0 sm:$0xff] }
 0x360   :  { %2326 = vpow2.f32 %v2001_v9  ;;  %v2002_v13 = vmul.f32 -1.442695, %v1578_v10 }
 0x362   :  { %2328 = vpow2.f32 %v2002_v13 }
 0x36d   :  { %v2327_v8 = vpop.eup %2326 }
 0x36e   :  { %v1588_v14 = vadd.f32 1.0, %v2327_v8 }
 0x36f   :  { %v2329_v15 = vpop.eup %2328 }
 0x370   :  { %2330 = vrcp.f32 %v1588_v14  ;;  %v1589_v0 = vadd.f32 1.0, %v2329_v15 }
 0x372   :  { %2332 = vrcp.f32 %v1589_v0 }
 0x37d   :  { %v2331_v16 = vpop.eup %2330 }
 0x37e   :  { %v1596_v17 = vrot.slane %v2331_v16, 4 }
 0x37f   :  { %v2333_v18 = vpop.eup %2332 }
 0x380   :  { %v1597_v20 = vadd.f32 %v2331_v16, %v1596_v17  ;;  %v1602_v21 = vrot.slane %v2333_v18, 4 }
 0x382   :  { %v1598_v22 = vrot.slane %v1597_v20, 2  ;;  %v1603_v23 = vadd.f32 %v2333_v18, %v1602_v21 }
 0x384   :  { %v1599_v24 = vadd.f32 %v1598_v22, %v1597_v20  ;;  %v1604_v26 = vrot.slane %v1603_v23, 2 }
 0x386   :  { %v1600_v28 = vrot.slane %v1599_v24, 1  ;;  %v1605_v29 = vadd.f32 %v1604_v26, %v1603_v23 }
 0x388   :  { %v1601_v60 = vadd.f32 %v1600_v28, %v1599_v24  ;;  %v1606_v30 = vrot.slane %v1605_v29, 1 }
 0x38a   :  { %v1608_v31 = vmul.f32 0.125, %v1601_v60  ;;  %v1607_v32 = vadd.f32 %v1606_v30, %v1605_v29 }
 0x38c   :  { %v1610_v33 = vsub.f32 %v2331_v16, %v1608_v31  ;;  %v1609_v34 = vmul.f32 0.125, %v1607_v32 }
 0x38e   :  { %v1611_v35 = vsub.f32 %v2333_v18, %v1609_v34  ;;  %v1612_v37 = vmul.f32 %v1610_v33, %v1610_v33 }
 0x390   :  { %v1613_v38 = vmul.f32 %v1611_v35, %v1611_v35  ;;  %v1614_v39 = vrot.slane %v1612_v37, 4 }
 0x392   :  { %v1615_v41 = vadd.f32 %v1614_v39, %v1612_v37  ;;  %v1620_v42 = vrot.slane %v1613_v38, 4 }
 0x394   :  { %v1616_v43 = vrot.slane %v1615_v41, 2  ;;  %v1621_v44 = vadd.f32 %v1620_v42, %v1613_v38 }
 0x396   :  { %v1617_v5 = vadd.f32 %v1616_v43, %v1615_v41  ;;  %v1622_v45 = vrot.slane %v1621_v44, 2 }
 0x398   :  { %v1618_v46 = vrot.slane %v1617_v5, 1  ;;  %v1623_v25 = vadd.f32 %v1622_v45, %v1621_v44 }
 0x39a   :  { %v1619_v47 = vadd.f32 %v1618_v46, %v1617_v5  ;;  %v1624_v27 = vrot.slane %v1623_v25, 1 }
 0x39c   :  { %v1625_v48 = vadd.f32 %v1624_v27, %v1623_v25  ;;  %v1626_v49 = vmul.f32 0.125, %v1619_v47 }
 0x39e   :  { %v1627_v36 = vmul.f32 0.125, %v1625_v48  ;;  %v1628_v40 = vadd.f32 1e-05, %v1626_v49 }
 0x3a0   :  { %v1629_v50 = vadd.f32 1e-05, %v1627_v36  ;;  %2334 = vrsqrt.f32 %v1628_v40 }
 0x3a2   :  { %2336 = vrsqrt.f32 %v1629_v50 }
 0x3ad   :  { %v2335_v51 = vpop.eup %2334 }
 0x3af   :  { %v2337_v52 = vpop.eup %2336 }
 0x3b0   :  { %v1634_v53 = vcombine.low %v2335_v51, %v2337_v52 }
 0x3b2   :  { %v1641_v54 = vrot.slane %v1634_v53, %v2652_v19 }
 0x3b4   :  { %v1648_v56 = vrot.slane %v1641_v54, %v2652_v19 }
 0x3b6   :  { %v1650_v58 = vmul.f32 %v1648_v56, %v1594_v55 }
 0x3b8   :  { %v1659_v59 = vrot.slane %v1650_v58, %v2643_v63  ;;  %v1655_v2 = vrot.slane %v1650_v58, %v2637_v61 }
 0x3ba   :  { %v1663_v3 = vmul.f32 %v1659_v59, %v1611_v35  ;;  %v1662_v4 = vmul.f32 %v1655_v2, %v1610_v33 }
 0x3bc   :  { %v1676_v6 = vadd.f32 %v1672_v1, %v1663_v3  ;;  %v1675_v7 = vadd.f32 %v1668_v62, %v1662_v4 }
 0x3be   :  { %v1678_v9 = vpack.c.bf16 %v1676_v6, %v1676_v6  ;;  %v1677_v10 = vpack.c.bf16 %v1675_v7, %v1675_v7 }
 0x3c0   :  { %1846 = vmatprep.mubr.bf16.mxu0 %v1678_v9 }
 0x3c1   :  { %1847 = vmatmul.mubr.bf16.vlgmr.msra.gmra.mxu0 %v1677_v10 }
 0x481   :  { %v2070_v19 = vpop.f32.mrf.mxu0 }
 0x483   :  { %v2071_v12 = vpop.f32.mrf.mxu0 }
 0x484   :  { %v2072_v13 = vadd.f32 %v2071_v12, %v2070_v19 }
 0x485   :  { %v2073_v63 = vpop.f32.mrf.mxu0 }
 0x486   :  { %v1849_v8 = vadd.f32 %v2072_v13, %v2003_v11 }
 0x487   :  { %v2074_v61 = vpop.f32.mrf.mxu0 }
 0x488   :  { %1854 = vst [vmem:[#allocation14] sm:$0xff] %v1849_v8 }
 0x489   :  { %2489 = shalt.err (!%p2486_p11)
}
 0x48a   :  { %1864 = dma.vmem_to_hbm [thread:$0]  %s1862_s16, 128, %s2742_s15, [#allocation4]  }
 0x48b   :  { %2506 = dma.done.wait [#allocation4], 128  }
 0x48c   :  { %2507 = vsyncadd [#allocation4], 4294967168 }
 0x48d   :  { %1868 = vsyncpa [#allocation3], 1 }
 0x48e   :  { %1869 = vsyncpa [#allocation6], 1 }
 0x48f   :  { %1870 = vsyncpa [#allocation9], 1 }
 0x490   :  { %1871 = vsyncpa [#allocation12], 1 }
 0x491   :  { %1872 = vsyncpa [#allocation4], 1 }

</bundles_post_ra>
